<compile_context>
chip_gen: v7x
topology: tpu7x:2x2x1
jax: 0.10.0
libtpu: 0.0.40
codegen_flags: <defaults>
</compile_context>

<pallas_src>
import functools

import jax
import jax.numpy as jnp
from jax.experimental import pallas as pl
from jax.experimental.pallas import tpu as pltpu


# --------------------------------------------------------------------------
# Pallas kernel: the full prediction head for one batch tile.
# --------------------------------------------------------------------------
def _head_kernel(rep_ref, rfeat_ref,
                 w1_ref, c1_ref, w2_ref, c2_ref, w3_ref, b3_ref, ones_ref,
                 out_ref, *, a1, a2):
    f32 = jnp.float32
    bf16 = jnp.bfloat16

    # Linear 4H -> 8H (BN folded into weights/bias), one K=4H MXU pass.
    h1 = jnp.dot(rep_ref[...], w1_ref[...], preferred_element_type=f32)
    h1 = h1 + c1_ref[...]
    h1 = jnp.where(h1 > 0, h1, a1 * h1)            # PReLU (alpha baked in)

    # Linear 8H -> 4H (BN folded) + PReLU.
    h2 = jnp.dot(h1.astype(bf16), w2_ref[...], preferred_element_type=f32)
    h2 = h2 + c2_ref[...]
    h2 = jnp.where(h2 > 0, h2, a2 * h2)

    # Linear 4H -> H.
    h3 = jnp.dot(h2.astype(bf16), w3_ref[...], preferred_element_type=f32)
    h3 = h3 + b3_ref[...]

    # (lin(rep) * rfeat).sum(-1) -> sigmoid, produced lane-dense as
    # (1, BTILE) by reducing on the MXU against a resident bf16 ones row
    # (frees the XLU, avoids a 1-lane masked store, single bf16 MXU pass).
    prod = (h3 * rfeat_ref[...]).astype(bf16)      # (BTILE, H)
    logit = jax.lax.dot_general(
        ones_ref[...], prod,
        dimension_numbers=(((1,), (1,)), ((), ())),
        preferred_element_type=f32)                # (1, BTILE)
    out_ref[0] = jax.nn.sigmoid(logit)


# --------------------------------------------------------------------------
# Batch-tile selection: as large as possible (amortize per-step overhead),
# but keep >= 2 grid tiles when the batch allows so v7x's second TensorCore
# gets work ("parallel" batch axis).
# --------------------------------------------------------------------------
def _pick_btile(batch, cap=1024):
    bp = ((batch + 127) // 128) * 128
    btile = min(bp, cap)
    if bp > 128:
        half = ((bp // 2 + 127) // 128) * 128
        btile = min(btile, max(half, 128))
    return max(btile, 128)


# --------------------------------------------------------------------------
# Wrapper: batch grid, resident weights, streamed bf16 activations.
# --------------------------------------------------------------------------
@functools.partial(jax.jit, static_argnames=("a1", "a2"))
def head_forward(x_node_h, x_line_h, x_node_t, x_line_t, rfeat, weights,
                 *, a1, a2):
    """Four (B, H) encoder outputs + (B, H) relation feature -> (B,) probs."""
    B, H = x_node_h.shape
    btile = _pick_btile(B)
    n_tiles = pl.cdiv(B, btile)
    Bp = n_tiles * btile

    # rep = cat([x_node_h, x_line_h, x_node_t, x_line_t], -1), streamed bf16.
    # In a full model the concat/cast/pad chain is a fused epilogue of the
    # encoder; XLA fuses it with the producer so no extra HBM round trip.
    rep = jnp.concatenate(
        [x_node_h, x_line_h, x_node_t, x_line_t], axis=-1).astype(jnp.bfloat16)
    if Bp != B:
        # TODO(synk): for ragged B >= btile in production, have the encoder
        # emit batch-padded buffers instead of this pad copy.
        rep = jnp.pad(rep, ((0, Bp - B), (0, 0)))
        rfeat = jnp.pad(rfeat, ((0, Bp - B), (0, 0)))

    ones = jnp.ones((1, H), jnp.bfloat16)          # resident reduction vector

    rep_spec = pl.BlockSpec((btile, 4 * H), lambda i: (i, 0))
    rfeat_spec = pl.BlockSpec((btile, H), lambda i: (i, 0))

    def resident(arr):
        # Weights / biases / ones: same block every grid step -> VMEM resident.
        # (If hidden_dim is scaled up, K-tile w1/w2 over a grid axis or cap
        # their buffering so the footprint stays inside v7x's 64 MiB VMEM.)
        nd = arr.ndim
        return pl.BlockSpec(arr.shape, lambda i, _nd=nd: (0,) * _nd)

    w_names = ("w1", "c1", "w2", "c2", "w3", "b3")
    w_args = [weights[k] for k in w_names] + [ones]

    kernel = functools.partial(_head_kernel, a1=a1, a2=a2)

    # Advisory cost estimate (lets XLA schedule the embedding gather and
    # producer fusions around the custom call).
    flops = 2 * Bp * (4 * H * 8 * H + 8 * H * 4 * H + 4 * H * H + H)
    bytes_accessed = (rep.size * 2 + rfeat.size * 4
                      + sum(int(w.size) * (2 if w.dtype == jnp.bfloat16 else 4)
                            for w in w_args)
                      + Bp * 4)
    cost = pl.CostEstimate(flops=flops, transcendentals=Bp,
                           bytes_accessed=bytes_accessed)

    out = pl.pallas_call(
        kernel,
        out_shape=jax.ShapeDtypeStruct((n_tiles, 1, btile), jnp.float32),
        grid=(n_tiles,),
        in_specs=[rep_spec, rfeat_spec] + [resident(w) for w in w_args],
        out_specs=pl.BlockSpec((1, 1, btile), lambda i: (i, 0, 0)),
        compiler_params=pltpu.CompilerParams(
            dimension_semantics=("parallel",),
            vmem_limit_bytes=32 * 1024 * 1024),
        cost_estimate=cost,
    )(rep, rfeat, *w_args)

    return out.reshape(-1)[:B]


# --------------------------------------------------------------------------
# Parameter construction (deterministic; eval-mode BatchNorm folded into the
# linear layers, weights cast to bf16, PReLU alphas returned as Python floats
# so they can be baked into the kernel as compile-time constants).
# --------------------------------------------------------------------------
def init_params(key, hidden_dim):
    H = hidden_dim
    ks = jax.random.split(key, 12)

    def linear(kw, kb, fan_in, fan_out):
        bound = 1.0 / jnp.sqrt(fan_in)
        w = jax.random.uniform(kw, (fan_in, fan_out), jnp.float32, -bound, bound)
        b = jax.random.uniform(kb, (1, fan_out), jnp.float32, -bound, bound)
        return w, b

    def folded_bn(kg, kb, km, kv, n):
        gamma = 1.0 + 0.1 * jax.random.normal(kg, (1, n), jnp.float32)
        beta = 0.1 * jax.random.normal(kb, (1, n), jnp.float32)
        mean = 0.1 * jax.random.normal(km, (1, n), jnp.float32)
        var = jnp.abs(1.0 + 0.1 * jax.random.normal(kv, (1, n), jnp.float32))
        scale = gamma / jnp.sqrt(var + 1e-5)
        shift = beta - mean * scale
        return scale, shift

    w1, b1 = linear(ks[0], ks[1], 4 * H, 8 * H)
    s1, t1 = folded_bn(ks[2], ks[3], ks[4], ks[5], 8 * H)
    w2, b2 = linear(ks[6], ks[7], 8 * H, 4 * H)
    s2, t2 = folded_bn(ks[8], ks[9], ks[10], ks[11], 4 * H)
    w3, b3 = linear(jax.random.fold_in(key, 100), jax.random.fold_in(key, 101),
                    4 * H, H)

    # Fold BN into the linears:  bn(x@w + b) = x@(w*s) + (b*s + t)
    weights = {
        "w1": (w1 * s1).astype(jnp.bfloat16),
        "c1": (b1 * s1 + t1).astype(jnp.float32),
        "w2": (w2 * s2).astype(jnp.bfloat16),
        "c2": (b2 * s2 + t2).astype(jnp.float32),
        "w3": w3.astype(jnp.bfloat16),
        "b3": b3.astype(jnp.float32),
    }
    # PReLU (num_parameters=1) default init = 0.25; compile-time constants.
    a1 = 0.25
    a2 = 0.25
    return weights, a1, a2


def nn_model3_forward(x_node_h, x_line_h, x_node_t, x_line_t,
                      rels, rmodule_table, weights, a1, a2):
    """Mirrors nnModel3.forward after the encoder/attention stage.

    Returns (output, h_g_node_list, h_g_line_list, t_g_node_list,
    t_g_line_list) with empty aux lists (see TODO(synk) above).
    """
    # rfeat = self.rmodule(rels)   (embedding gather -- plain JAX glue)
    rfeat = rmodule_table[rels]
    output = head_forward(x_node_h, x_line_h, x_node_t, x_line_t, rfeat,
                          weights, a1=a1, a2=a2)
    return output, [], [], [], []


# --------------------------------------------------------------------------
if __name__ == "__main__":
    key = jax.random.PRNGKey(0)
    B = 8            # batch
    H = 32           # hidden_dim
    N_RELS = 1316    # nn.Embedding(1316, hidden_dim)

    k_enc, k_rels, k_emb, k_par = jax.random.split(key, 4)
    ke = jax.random.split(k_enc, 4)

    # Stand-ins for DrugEncoder / hierarchical_mutual_attn outputs: (B, H) each.
    x_node_h = jax.random.normal(ke[0], (B, H), jnp.float32)
    x_line_h = jax.random.normal(ke[1], (B, H), jnp.float32)
    x_node_t = jax.random.normal(ke[2], (B, H), jnp.float32)
    x_line_t = jax.random.normal(ke[3], (B, H), jnp.float32)

    rels = jax.random.randint(k_rels, (B,), 0, N_RELS, jnp.int32)
    rmodule_table = jax.random.normal(k_emb, (N_RELS, H), jnp.float32)

    weights, a1, a2 = init_params(k_par, H)

    out, *_ = nn_model3_forward(x_node_h, x_line_h, x_node_t, x_line_t,
                                rels, rmodule_table, weights, a1, a2)
    out = jax.block_until_ready(out)
    assert out.shape == (B,)
    assert bool(jnp.all(jnp.isfinite(out)))
    assert bool(jnp.all((out >= 0.0) & (out <= 1.0)))
    print("KERNEL_OK")
</pallas_src>

<mosaic_0001>
module attributes {stable_mosaic.version = 11 : i64} {
  func.func @_head_kernel(%arg0: i32, %arg1: memref<128x128xbf16, #tpu.memory_space<vmem>>, %arg2: memref<128x32xf32, #tpu.memory_space<vmem>>, %arg3: memref<128x256xbf16, #tpu.memory_space<vmem>>, %arg4: memref<1x256xf32, #tpu.memory_space<vmem>>, %arg5: memref<256x128xbf16, #tpu.memory_space<vmem>>, %arg6: memref<1x128xf32, #tpu.memory_space<vmem>>, %arg7: memref<128x32xbf16, #tpu.memory_space<vmem>>, %arg8: memref<1x32xf32, #tpu.memory_space<vmem>>, %arg9: memref<1x32xbf16, #tpu.memory_space<vmem>>, %arg10: memref<1x1x128xf32, #tpu.memory_space<vmem>>) attributes {dimension_semantics = [#tpu.dimension_semantics<parallel>], iteration_bounds = array<i64: 1>, scalar_prefetch = 0 : i64, scratch_operands = 0 : i64, tpu.core_type = #tpu.core_type<tc>, window_params = [{transform_indices = @transform_0, window_bounds = array<i64: 128, 128>}, {transform_indices = @transform_1, window_bounds = array<i64: 128, 32>}, {pipeline_mode = #tpu.pipeline_mode<synchronous>, transform_indices = @transform_2, window_bounds = array<i64: 128, 256>}, {pipeline_mode = #tpu.pipeline_mode<synchronous>, transform_indices = @transform_3, window_bounds = array<i64: 1, 256>}, {pipeline_mode = #tpu.pipeline_mode<synchronous>, transform_indices = @transform_4, window_bounds = array<i64: 256, 128>}, {pipeline_mode = #tpu.pipeline_mode<synchronous>, transform_indices = @transform_5, window_bounds = array<i64: 1, 128>}, {pipeline_mode = #tpu.pipeline_mode<synchronous>, transform_indices = @transform_6, window_bounds = array<i64: 128, 32>}, {pipeline_mode = #tpu.pipeline_mode<synchronous>, transform_indices = @transform_7, window_bounds = array<i64: 1, 32>}, {pipeline_mode = #tpu.pipeline_mode<synchronous>, transform_indices = @transform_8, window_bounds = array<i64: 1, 32>}, {transform_indices = @transform_9, window_bounds = array<i64: 1, 1, 128>}]} {
    %c0 = arith.constant 0 : index
    %c0_0 = arith.constant 0 : index
    %0 = vector.load %arg1[%c0, %c0_0] : memref<128x128xbf16, #tpu.memory_space<vmem>>, vector<128x128xbf16>
    %c0_1 = arith.constant 0 : index
    %c0_2 = arith.constant 0 : index
    %1 = vector.load %arg3[%c0_1, %c0_2] : memref<128x256xbf16, #tpu.memory_space<vmem>>, vector<128x256xbf16>
    %cst = arith.constant dense<0.000000e+00> : vector<128x256xf32>
    %2 = tpu.matmul %0, %1, %cst {dimension_numbers = #tpu.dot_dimension_numbers<[1], [0], [0], [1], [0, 0, 1, 1], [], []>} : vector<128x128xbf16>, vector<128x256xbf16>, vector<128x256xf32> -> vector<128x256xf32>
    %c0_3 = arith.constant 0 : index
    %c0_4 = arith.constant 0 : index
    %3 = vector.load %arg4[%c0_3, %c0_4] : memref<1x256xf32, #tpu.memory_space<vmem>>, vector<1x256xf32>
    %4 = vector.broadcast %3 : vector<1x256xf32> to vector<128x256xf32>
    %5 = arith.addf %2, %4 : vector<128x256xf32>
    %cst_5 = arith.constant 0.000000e+00 : f32
    %6 = vector.broadcast %cst_5 : f32 to vector<128x256xf32>
    %7 = arith.cmpf ogt, %5, %6 : vector<128x256xf32>
    %cst_6 = arith.constant 2.500000e-01 : f32
    %8 = vector.broadcast %cst_6 : f32 to vector<128x256xf32>
    %9 = arith.mulf %8, %5 : vector<128x256xf32>
    %10 = arith.select %7, %5, %9 : vector<128x256xi1>, vector<128x256xf32>
    %11 = arith.truncf %10 : vector<128x256xf32> to vector<128x256xbf16>
    %c0_7 = arith.constant 0 : index
    %c0_8 = arith.constant 0 : index
    %12 = vector.load %arg5[%c0_7, %c0_8] : memref<256x128xbf16, #tpu.memory_space<vmem>>, vector<256x128xbf16>
    %cst_9 = arith.constant dense<0.000000e+00> : vector<128x128xf32>
    %13 = tpu.matmul %11, %12, %cst_9 {dimension_numbers = #tpu.dot_dimension_numbers<[1], [0], [0], [1], [0, 0, 1, 1], [], []>} : vector<128x256xbf16>, vector<256x128xbf16>, vector<128x128xf32> -> vector<128x128xf32>
    %c0_10 = arith.constant 0 : index
    %c0_11 = arith.constant 0 : index
    %14 = vector.load %arg6[%c0_10, %c0_11] : memref<1x128xf32, #tpu.memory_space<vmem>>, vector<1x128xf32>
    %15 = vector.broadcast %14 : vector<1x128xf32> to vector<128x128xf32>
    %16 = arith.addf %13, %15 : vector<128x128xf32>
    %cst_12 = arith.constant 0.000000e+00 : f32
    %17 = vector.broadcast %cst_12 : f32 to vector<128x128xf32>
    %18 = arith.cmpf ogt, %16, %17 : vector<128x128xf32>
    %cst_13 = arith.constant 2.500000e-01 : f32
    %19 = vector.broadcast %cst_13 : f32 to vector<128x128xf32>
    %20 = arith.mulf %19, %16 : vector<128x128xf32>
    %21 = arith.select %18, %16, %20 : vector<128x128xi1>, vector<128x128xf32>
    %22 = arith.truncf %21 : vector<128x128xf32> to vector<128x128xbf16>
    %c0_14 = arith.constant 0 : index
    %c0_15 = arith.constant 0 : index
    %23 = vector.load %arg7[%c0_14, %c0_15] : memref<128x32xbf16, #tpu.memory_space<vmem>>, vector<128x32xbf16>
    %cst_16 = arith.constant dense<0.000000e+00> : vector<128x32xf32>
    %24 = tpu.matmul %22, %23, %cst_16 {dimension_numbers = #tpu.dot_dimension_numbers<[1], [0], [0], [1], [0, 0, 1, 1], [], []>} : vector<128x128xbf16>, vector<128x32xbf16>, vector<128x32xf32> -> vector<128x32xf32>
    %c0_17 = arith.constant 0 : index
    %c0_18 = arith.constant 0 : index
    %25 = vector.load %arg8[%c0_17, %c0_18] : memref<1x32xf32, #tpu.memory_space<vmem>>, vector<1x32xf32>
    %26 = vector.broadcast %25 : vector<1x32xf32> to vector<128x32xf32>
    %27 = arith.addf %24, %26 : vector<128x32xf32>
    %c0_19 = arith.constant 0 : index
    %c0_20 = arith.constant 0 : index
    %28 = vector.load %arg2[%c0_19, %c0_20] : memref<128x32xf32, #tpu.memory_space<vmem>>, vector<128x32xf32>
    %29 = arith.mulf %27, %28 : vector<128x32xf32>
    %30 = arith.truncf %29 : vector<128x32xf32> to vector<128x32xbf16>
    %c0_21 = arith.constant 0 : index
    %c0_22 = arith.constant 0 : index
    %31 = vector.load %arg9[%c0_21, %c0_22] : memref<1x32xbf16, #tpu.memory_space<vmem>>, vector<1x32xbf16>
    %cst_23 = arith.constant dense<0.000000e+00> : vector<1x128xf32>
    %32 = tpu.matmul %31, %30, %cst_23 {dimension_numbers = #tpu.dot_dimension_numbers<[1], [1], [0], [0], [0, 0, 1, 0], [], []>} : vector<1x32xbf16>, vector<128x32xbf16>, vector<1x128xf32> -> vector<1x128xf32>
    %33 = arith.negf %32 : vector<1x128xf32>
    %34 = math.exp %33 : vector<1x128xf32>
    %cst_24 = arith.constant 1.000000e+00 : f32
    %35 = vector.broadcast %cst_24 : f32 to vector<1x128xf32>
    %36 = arith.addf %35, %34 : vector<1x128xf32>
    %37 = arith.divf %35, %36 : vector<1x128xf32>
    %c0_25 = arith.constant 0 : index
    %c0_26 = arith.constant 0 : index
    %c0_27 = arith.constant 0 : index
    %38 = vector.load %arg10[%c0_25, %c0_26, %c0_27] : memref<1x1x128xf32, #tpu.memory_space<vmem>>, vector<1x1x128xf32>
    %39 = vector.shape_cast %38 : vector<1x1x128xf32> to vector<1x128xf32>
    %40 = vector.shape_cast %37 : vector<1x128xf32> to vector<1x1x128xf32>
    tpu.vector_store %arg10[%c0_25, %c0_26, %c0_27], %40 {strides = array<i32>} : memref<1x1x128xf32, #tpu.memory_space<vmem>>, vector<1x1x128xf32>,
    return
  }
  func.func @transform_0(%arg0: i32) -> (i32, i32) {
    %c0_i32 = arith.constant 0 : i32
    %c0_i32_0 = arith.constant 0 : i32
    return %arg0, %c0_i32 : i32, i32
  }
  func.func @transform_1(%arg0: i32) -> (i32, i32) {
    %c0_i32 = arith.constant 0 : i32
    %c0_i32_0 = arith.constant 0 : i32
    return %arg0, %c0_i32 : i32, i32
  }
  func.func @transform_2(%arg0: i32) -> (i32, i32) {
    %c0_i32 = arith.constant 0 : i32
    %c0_i32_0 = arith.constant 0 : i32
    %c0_i32_1 = arith.constant 0 : i32
    return %c0_i32, %c0_i32_0 : i32, i32
  }
  func.func @transform_3(%arg0: i32) -> (i32, i32) {
    %c0_i32 = arith.constant 0 : i32
    %c0_i32_0 = arith.constant 0 : i32
    %c0_i32_1 = arith.constant 0 : i32
    return %c0_i32, %c0_i32_0 : i32, i32
  }
  func.func @transform_4(%arg0: i32) -> (i32, i32) {
    %c0_i32 = arith.constant 0 : i32
    %c0_i32_0 = arith.constant 0 : i32
    %c0_i32_1 = arith.constant 0 : i32
    return %c0_i32, %c0_i32_0 : i32, i32
  }
  func.func @transform_5(%arg0: i32) -> (i32, i32) {
    %c0_i32 = arith.constant 0 : i32
    %c0_i32_0 = arith.constant 0 : i32
    %c0_i32_1 = arith.constant 0 : i32
    return %c0_i32, %c0_i32_0 : i32, i32
  }
  func.func @transform_6(%arg0: i32) -> (i32, i32) {
    %c0_i32 = arith.constant 0 : i32
    %c0_i32_0 = arith.constant 0 : i32
    %c0_i32_1 = arith.constant 0 : i32
    return %c0_i32, %c0_i32_0 : i32, i32
  }
  func.func @transform_7(%arg0: i32) -> (i32, i32) {
    %c0_i32 = arith.constant 0 : i32
    %c0_i32_0 = arith.constant 0 : i32
    %c0_i32_1 = arith.constant 0 : i32
    return %c0_i32, %c0_i32_0 : i32, i32
  }
  func.func @transform_8(%arg0: i32) -> (i32, i32) {
    %c0_i32 = arith.constant 0 : i32
    %c0_i32_0 = arith.constant 0 : i32
    %c0_i32_1 = arith.constant 0 : i32
    return %c0_i32, %c0_i32_0 : i32, i32
  }
  func.func @transform_9(%arg0: i32) -> (i32, i32, i32) {
    %c0_i32 = arith.constant 0 : i32
    %c0_i32_0 = arith.constant 0 : i32
    %c0_i32_1 = arith.constant 0 : i32
    return %arg0, %c0_i32, %c0_i32_0 : i32, i32, i32
  }
}

</mosaic_0001>

<bundles_post_ra>
// kernel: head_forward.1
= control target key start
LH: loop header
LB: loop body
LE: loop exit
PB: predicated region body
PF: predicated region fallthrough
CT: control target
= control target key end

     0   :  { %v1262_v1 = vmov 0   ;;  %v67_v47 = vlaneseq  ;;  %s1620_s2 = inlined_call_operand.vmem [shape: bf16[128,256], index: 2, kind: input, shape index: {}]   ;;  %s1621_s0 = inlined_call_operand.vmem [shape: bf16[128,128], index: 0, kind: input, shape index: {}]   ;;  %s1622_s4 = inlined_call_operand.vmem [shape: bf16[256,128], index: 4, kind: input, shape index: {}]   ;;  %s1623_s6 = inlined_call_operand.vmem [shape: bf16[128,32], index: 6, kind: input, shape index: {}]   ;;  %s1624_s3 = inlined_call_operand.vmem [shape: f32[1,256], index: 3, kind: input, shape index: {}]   ;;  %s1625_s5 = inlined_call_operand.vmem [shape: f32[1,128], index: 5, kind: input, shape index: {}]   ;;  %s1626_s7 = inlined_call_operand.vmem [shape: f32[1,32], index: 7, kind: input, shape index: {}]   ;;  %s1627_s1 = inlined_call_operand.vmem [shape: f32[128,32], index: 1, kind: input, shape index: {}]   ;;  %s1628_s8 = inlined_call_operand.vmem [shape: bf16[1,32], index: 8, kind: input, shape index: {}]   ;;  %s1629_s9 = inlined_call_operand.vmem [shape: f32[1,1,128], index: 9, kind: output, shape index: {}]  }
   0x1   :  { %v1202_v0 = vld [vmem:[%s1620_s2 + $0x4] ss:$8 sps:$4 sm:$0xff]   ;;  %237 = vmatprep.mubr.bf16.mxu0 %v1262_v1  ;;  %v1204_v2 = vld [vmem:[%s1620_s2] ss:$8 sps:$4 sm:$0xff]   ;;  %v1205_v3 = vld [vmem:[%s1620_s2 + $0x14] ss:$8 sps:$4 sm:$0xff]  }
   0x2   :  { %205 = vmatprep.subr.bf16.mxu0 %v1202_v0  ;;  %v1207_v4 = vld [vmem:[%s1620_s2 + $0x10] ss:$8 sps:$4 sm:$0xff]   ;;  %v1208_v5 = vld [vmem:[%s1620_s2 + $0x24] ss:$8 sps:$4 sm:$0xff]   ;;  %v1210_v6 = vld [vmem:[%s1620_s2 + $0x20] ss:$8 sps:$4 sm:$0xff]  }
   0x3   :  { %206 = vmatpush1.bf16.msra.mxu0 %v1204_v2  ;;  %v1211_v7 = vld [vmem:[%s1620_s2 + $0x34] ss:$8 sps:$4 sm:$0xff]   ;;  %v1213_v8 = vld [vmem:[%s1620_s2 + $0x30] ss:$8 sps:$4 sm:$0xff]   ;;  %v1214_v9 = vld [vmem:[%s1620_s2 + $0x44] ss:$8 sps:$4 sm:$0xff]  }
   0x4   :  { %207 = vmatprep.subr.bf16.mxu0 %v1205_v3  ;;  %v1216_v10 = vld [vmem:[%s1620_s2 + $0x40] ss:$8 sps:$4 sm:$0xff]   ;;  %v1217_v11 = vld [vmem:[%s1620_s2 + $0x54] ss:$8 sps:$4 sm:$0xff]   ;;  %v1219_v12 = vld [vmem:[%s1620_s2 + $0x50] ss:$8 sps:$4 sm:$0xff]  }
   0x5   :  { %v1220_v13 = vld [vmem:[%s1620_s2 + $0x64] ss:$8 sps:$4 sm:$0xff]   ;;  %v1222_v16 = vld [vmem:[%s1620_s2 + $0x60] ss:$8 sps:$4 sm:$0xff]   ;;  %v1238_v19 = vld [vmem:[%s1622_s4 + $0x50] sm:$0xff]   ;;  %v68_v48 = vshrl.u32 %v67_v47, 7 }
   0x6   :  { %v1234_v14 = vld [vmem:[%s1622_s4 + $0x40] sm:$0xff]   ;;  %v1236_v17 = vld [vmem:[%s1622_s4 + $0x48] sm:$0xff]   ;;  %v1223_v20 = vld [vmem:[%s1620_s2 + $0x74] ss:$8 sps:$4 sm:$0xff]  }
   0x7   :  { %208 = vmatpush1.bf16.msra.mxu0 %v1207_v4  ;;  %v1235_v15 = vld [vmem:[%s1622_s4] sm:$0xff]   ;;  %1058 = vmatprep.subr.bf16.mxu1 %v1234_v14  ;;  %v1237_v18 = vld [vmem:[%s1622_s4 + $0x8] sm:$0xff]   ;;  %v1225_v21 = vld [vmem:[%s1620_s2 + $0x70] ss:$8 sps:$4 sm:$0xff]   ;;  %v69_v49 = vsub.s32 0, %v68_v48  ;;  %v73_v51 = vsub.s32 1, %v68_v48 }
   0x8   :  { %209 = vmatprep.subr.bf16.mxu0 %v1208_v5  ;;  %1059 = vmatpush3.bf16.msra.mxu1 %v1235_v15  ;;  %v1239_v22 = vld [vmem:[%s1622_s4 + $0x10] sm:$0xff]   ;;  %v1240_v23 = vld [vmem:[%s1622_s4 + $0x58] sm:$0xff]   ;;  %v1226_v24 = vld [vmem:[%s1621_s0] sm:$0xff]  }
   0x9   :  { %1060 = vmatprep.subr.bf16.mxu1 %v1236_v17  ;;  %v1241_v25 = vld [vmem:[%s1622_s4 + $0x18] sm:$0xff]   ;;  %v1242_v26 = vld [vmem:[%s1622_s4 + $0x60] sm:$0xff]   ;;  %v1227_v28 = vld [vmem:[%s1621_s0 + $0x8] sm:$0xff]  }
   0xa   :  { %v1243_v27 = vld [vmem:[%s1622_s4 + $0x20] sm:$0xff]   ;;  %v1228_v29 = vld [vmem:[%s1621_s0 + $0x10] sm:$0xff]   ;;  %v1229_v30 = vld [vmem:[%s1621_s0 + $0x18] sm:$0xff]  }
   0xb   :  { %210 = vmatpush1.bf16.msra.mxu0 %v1210_v6  ;;  %v1230_v31 = vld [vmem:[%s1621_s0 + $0x20] sm:$0xff]   ;;  %v1231_v32 = vld [vmem:[%s1621_s0 + $0x28] sm:$0xff]   ;;  %v1232_v33 = vld [vmem:[%s1621_s0 + $0x30] sm:$0xff]  }
   0xc   :  { %211 = vmatprep.subr.bf16.mxu0 %v1211_v7  ;;  %1061 = vmatpush3.bf16.msra.mxu1 %v1237_v18  ;;  %v1233_v34 = vld [vmem:[%s1621_s0 + $0x38] sm:$0xff]   ;;  %v1244_v35 = vld [vmem:[%s1622_s4 + $0x68] sm:$0xff]   ;;  %v1246_v37 = vld [vmem:[%s1622_s4 + $0x70] sm:$0xff]  }
   0xd   :  { %1062 = vmatprep.subr.bf16.mxu1 %v1238_v19  ;;  %v1245_v36 = vld [vmem:[%s1622_s4 + $0x28] sm:$0xff]   ;;  %v1247_v38 = vld [vmem:[%s1622_s4 + $0x30] sm:$0xff]   ;;  %v1248_v39 = vld [vmem:[%s1622_s4 + $0x78] sm:$0xff]  }
   0xe   :  { %v1249_v40 = vld [vmem:[%s1622_s4 + $0x38] sm:$0xff]   ;;  %v1250_v41 = vld [vmem:[%s1623_s6] sm:$0xff]   ;;  %v1251_v42 = vld [vmem:[%s1623_s6 + $0x8] sm:$0xff]  }
   0xf   :  { %212 = vmatpush1.bf16.msra.mxu0 %v1213_v8  ;;  %v1252_v43 = vld [vmem:[%s1623_s6 + $0x10] sm:$0xff]   ;;  %v1253_v44 = vld [vmem:[%s1623_s6 + $0x18] sm:$0xff]   ;;  %v1254_v45 = vld [vmem:[%s1623_s6 + $0x20] sm:$0xff]  }
  0x10   :  { %213 = vmatprep.subr.bf16.mxu0 %v1214_v9  ;;  %1063 = vmatpush3.bf16.msra.mxu1 %v1239_v22  ;;  %v1255_v46 = vld [vmem:[%s1623_s6 + $0x28] sm:$0xff]   ;;  %v65_v50 = vld [vmem:[%s1624_s3] sm:$0x3] }
  0x11   :  { %1064 = vmatprep.subr.bf16.mxu1 %v1240_v23  ;;  %v1464_v52 = vrot.slane %v65_v50, %v69_v49  ;;  %v1466_v53 = vrot.slane %v65_v50, %v73_v51 }
  0x13   :  { %214 = vmatpush1.bf16.msra.mxu0 %v1216_v10 }
  0x14   :  { %215 = vmatprep.subr.bf16.mxu0 %v1217_v11  ;;  %1065 = vmatpush3.bf16.msra.mxu1 %v1241_v25 }
  0x15   :  { %1066 = vmatprep.subr.bf16.mxu1 %v1242_v26 }
  0x17   :  { %216 = vmatpush1.bf16.msra.mxu0 %v1219_v12 }
  0x18   :  { %217 = vmatprep.subr.bf16.mxu0 %v1220_v13  ;;  %1067 = vmatpush3.bf16.msra.mxu1 %v1243_v27 }
  0x19   :  { %1068 = vmatprep.subr.bf16.mxu1 %v1244_v35 }
  0x1b   :  { %218 = vmatpush1.bf16.msra.mxu0 %v1222_v16 }
  0x1c   :  { %219 = vmatprep.subr.bf16.mxu0 %v1223_v20  ;;  %1069 = vmatpush3.bf16.msra.mxu1 %v1245_v36 }
  0x1d   :  { %1070 = vmatprep.subr.bf16.mxu1 %v1246_v37 }
  0x1f   :  { %220 = vmatpush1.bf16.msra.mxu0 %v1225_v21 }
  0x20   :  { %1071 = vmatpush3.bf16.msra.mxu1 %v1247_v38  ;;  %1147 = vmatprep.subr.bf16.mxu0 %v1250_v41 }
  0x21   :  { %1072 = vmatprep.subr.bf16.mxu1 %v1248_v39 }
  0x22   :  { %238 = vmatmul.mubr.bf16.vlgmr.msra.gmra.mrb[0].mxu0 %v1226_v24 }
  0x23   :  { %247 = vmatprep.mubr.bf16.mxu0 %v1262_v1  ;;  %1148 = vmatpush3.bf16.msra.mxu0 %v1250_v41 }
  0x24   :  { %1073 = vmatpush3.bf16.msra.mxu1 %v1249_v40  ;;  %1149 = vmatprep.subr.bf16.mxu0 %v1251_v42 }
  0x27   :  { %1150 = vmatpush3.bf16.msra.mxu0 %v1251_v42 }
  0x28   :  { %1151 = vmatprep.subr.bf16.mxu0 %v1252_v43 }
  0x2a   :  { %248 = vmatmul.mubr.bf16.gmra.mrb[4].mxu0 %v1227_v28 }
  0x2b   :  { %257 = vmatprep.mubr.bf16.mxu0 %v1262_v1  ;;  %1152 = vmatpush3.bf16.msra.mxu0 %v1252_v43 }
  0x2c   :  { %1153 = vmatprep.subr.bf16.mxu0 %v1253_v44 }
  0x2f   :  { %1154 = vmatpush3.bf16.msra.mxu0 %v1253_v44 }
  0x30   :  { %1155 = vmatprep.subr.bf16.mxu0 %v1254_v45 }
  0x32   :  { %258 = vmatmul.mubr.bf16.gmra.mrb[8].mxu0 %v1228_v29 }
  0x33   :  { %267 = vmatprep.mubr.bf16.mxu0 %v1262_v1  ;;  %1156 = vmatpush3.bf16.msra.mxu0 %v1254_v45 }
  0x34   :  { %1157 = vmatprep.subr.bf16.mxu0 %v1255_v46 }
  0x37   :  { %1158 = vmatpush3.bf16.msra.mxu0 %v1255_v46 }
  0x3a   :  { %268 = vmatmul.mubr.bf16.gmra.mrb[12].mxu0 %v1229_v30 }
  0x3b   :  { %277 = vmatprep.mubr.bf16.mxu0 %v1262_v1 }
  0x42   :  { %278 = vmatmul.mubr.bf16.gmra.mrb[16].mxu0 %v1230_v31 }
  0x43   :  { %287 = vmatprep.mubr.bf16.mxu0 %v1262_v1 }
  0x4a   :  { %288 = vmatmul.mubr.bf16.gmra.mrb[20].mxu0 %v1231_v32 }
  0x4b   :  { %297 = vmatprep.mubr.bf16.mxu0 %v1262_v1 }
  0x52   :  { %298 = vmatmul.mubr.bf16.gmra.mrb[24].mxu0 %v1232_v33 }
  0x53   :  { %307 = vmatprep.mubr.bf16.mxu0 %v1262_v1 }
  0x5a   :  { %308 = vmatmul.mubr.bf16.gmra.mrb[28].mxu0 %v1233_v34 }
  0xf5   :  { %v239_v54 = vpop.f32.mrb[0].mxu0 }
  0xf6   :  { %v240_v55 = vadd.f32 %v239_v54, %v1464_v52  ;;  %v241_v56 = vpop.f32.mrb[1].mxu0 }
  0xf7   :  { %v242_v57 = vadd.f32 %v241_v56, %v1466_v53  ;;  %v243_v58 = vpop.f32.mrb[2].mxu0 }
  0xf8   :  { %v350_v59 = vmul.f32 0.25, %v240_v55  ;;  %v244_v60 = vadd.f32 %v243_v58, %v1464_v52  ;;  %v245_v61 = vpop.f32.mrb[3].mxu0  ;;  %vm318_vm0 = vcmp.gt.f32.partialorder %v240_v55, 0.0 }
  0xf9   :  { %v351_v62 = vmul.f32 0.25, %v242_v57  ;;  %v246_v63 = vadd.f32 %v245_v61, %v1466_v53  ;;  %vm319_vm2 = vcmp.gt.f32.partialorder %v242_v57, 0.0 }
  0xfa   :  { %vm320_vm1 = vcmp.gt.f32.partialorder %v244_v60, 0.0  ;;  %v352_v0 = vmul.f32 0.25, %v244_v60  ;;  %v382_v2 = vsel %vm318_vm0, %v240_v55, %v350_v59 }
  0xfb   :  { %v353_v1 = vmul.f32 0.25, %v246_v63  ;;  %vm321_vm3 = vcmp.gt.f32.partialorder %v246_v63, 0.0  ;;  %v383_v5 = vsel %vm319_vm2, %v242_v57, %v351_v62 }
  0xfc   :  { %v384_v3 = vsel %vm320_vm1, %v244_v60, %v352_v0 }
  0xfd   :  { %v249_v4 = vpop.f32.mrb[4].mxu0  ;;  %v385_v6 = vsel %vm321_vm3, %v246_v63, %v353_v1  ;;  %v414_v7 = vpack.c.bf16 %v384_v3, %v382_v2 }
  0xfe   :  { %v250_v8 = vadd.f32 %v249_v4, %v1464_v52  ;;  %v251_v9 = vpop.f32.mrb[5].mxu0  ;;  %v415_v10 = vpack.c.bf16 %v385_v6, %v383_v5 }
  0xff   :  { %v252_v11 = vadd.f32 %v251_v9, %v1466_v53  ;;  %v253_v12 = vpop.f32.mrb[6].mxu0 }
 0x100   :  { %v354_v13 = vmul.f32 0.25, %v250_v8  ;;  %v254_v14 = vadd.f32 %v253_v12, %v1464_v52  ;;  %v255_v15 = vpop.f32.mrb[7].mxu0  ;;  %597 = vmatprep.mubr.bf16.mxu1 %v415_v10  ;;  %vm322_vm4 = vcmp.gt.f32.partialorder %v250_v8, 0.0 }
 0x101   :  { %v355_v16 = vmul.f32 0.25, %v252_v11  ;;  %v256_v17 = vadd.f32 %v255_v15, %v1466_v53  ;;  %598 = vmatmul.mubr.bf16.vlgmr.msra.gmra.mrb[0].mxu1 %v414_v7  ;;  %vm323_vm5 = vcmp.gt.f32.partialorder %v252_v11, 0.0 }
 0x102   :  { %vm324_vm6 = vcmp.gt.f32.partialorder %v254_v14, 0.0  ;;  %v356_v18 = vmul.f32 0.25, %v254_v14  ;;  %v386_v20 = vsel %vm322_vm4, %v250_v8, %v354_v13 }
 0x103   :  { %vm325_vm7 = vcmp.gt.f32.partialorder %v256_v17, 0.0  ;;  %v357_v19 = vmul.f32 0.25, %v256_v17  ;;  %v387_v23 = vsel %vm323_vm5, %v252_v11, %v355_v16 }
 0x104   :  { %v388_v21 = vsel %vm324_vm6, %v254_v14, %v356_v18 }
 0x105   :  { %v259_v22 = vpop.f32.mrb[8].mxu0  ;;  %v389_v24 = vsel %vm325_vm7, %v256_v17, %v357_v19  ;;  %v416_v25 = vpack.c.bf16 %v388_v21, %v386_v20 }
 0x106   :  { %v260_v26 = vadd.f32 %v259_v22, %v1464_v52  ;;  %v261_v27 = vpop.f32.mrb[9].mxu0  ;;  %v417_v28 = vpack.c.bf16 %v389_v24, %v387_v23 }
 0x107   :  { %v262_v29 = vadd.f32 %v261_v27, %v1466_v53  ;;  %v263_v30 = vpop.f32.mrb[10].mxu0 }
 0x108   :  { %v358_v31 = vmul.f32 0.25, %v260_v26  ;;  %v264_v32 = vadd.f32 %v263_v30, %v1464_v52  ;;  %v265_v33 = vpop.f32.mrb[11].mxu0  ;;  %605 = vmatprep.mubr.bf16.mxu1 %v417_v28  ;;  %vm326_vm8 = vcmp.gt.f32.partialorder %v260_v26, 0.0 }
 0x109   :  { %v359_v34 = vmul.f32 0.25, %v262_v29  ;;  %v266_v35 = vadd.f32 %v265_v33, %v1466_v53  ;;  %606 = vmatmul.mubr.bf16.gmra.mrb[4].mxu1 %v416_v25  ;;  %vm327_vm9 = vcmp.gt.f32.partialorder %v262_v29, 0.0 }
 0x10a   :  { %vm328_vm10 = vcmp.gt.f32.partialorder %v264_v32, 0.0  ;;  %v360_v36 = vmul.f32 0.25, %v264_v32  ;;  %v390_v38 = vsel %vm326_vm8, %v260_v26, %v358_v31 }
 0x10b   :  { %vm329_vm11 = vcmp.gt.f32.partialorder %v266_v35, 0.0  ;;  %v361_v37 = vmul.f32 0.25, %v266_v35  ;;  %v391_v41 = vsel %vm327_vm9, %v262_v29, %v359_v34 }
 0x10c   :  { %v392_v39 = vsel %vm328_vm10, %v264_v32, %v360_v36 }
 0x10d   :  { %v269_v40 = vpop.f32.mrb[12].mxu0  ;;  %v393_v42 = vsel %vm329_vm11, %v266_v35, %v361_v37  ;;  %v418_v43 = vpack.c.bf16 %v392_v39, %v390_v38 }
 0x10e   :  { %v270_v44 = vadd.f32 %v269_v40, %v1464_v52  ;;  %v271_v45 = vpop.f32.mrb[13].mxu0  ;;  %v419_v46 = vpack.c.bf16 %v393_v42, %v391_v41 }
 0x10f   :  { %v272_v47 = vadd.f32 %v271_v45, %v1466_v53  ;;  %v273_v48 = vpop.f32.mrb[14].mxu0 }
 0x110   :  { %v362_v49 = vmul.f32 0.25, %v270_v44  ;;  %v274_v50 = vadd.f32 %v273_v48, %v1464_v52  ;;  %v275_v51 = vpop.f32.mrb[15].mxu0  ;;  %613 = vmatprep.mubr.bf16.mxu1 %v419_v46  ;;  %vm330_vm12 = vcmp.gt.f32.partialorder %v270_v44, 0.0 }
 0x111   :  { %v363_v54 = vmul.f32 0.25, %v272_v47  ;;  %v276_v55 = vadd.f32 %v275_v51, %v1466_v53  ;;  %614 = vmatmul.mubr.bf16.gmra.mrb[8].mxu1 %v418_v43  ;;  %vm331_vm13 = vcmp.gt.f32.partialorder %v272_v47, 0.0 }
 0x112   :  { %vm332_vm14 = vcmp.gt.f32.partialorder %v274_v50, 0.0  ;;  %v364_v56 = vmul.f32 0.25, %v274_v50  ;;  %v394_v58 = vsel %vm330_vm12, %v270_v44, %v362_v49 }
 0x113   :  { %vm333_vm15 = vcmp.gt.f32.partialorder %v276_v55, 0.0  ;;  %v365_v57 = vmul.f32 0.25, %v276_v55  ;;  %v395_v61 = vsel %vm331_vm13, %v272_v47, %v363_v54 }
 0x114   :  { %v396_v59 = vsel %vm332_vm14, %v274_v50, %v364_v56 }
 0x115   :  { %v279_v60 = vpop.f32.mrb[16].mxu0  ;;  %v397_v62 = vsel %vm333_vm15, %v276_v55, %v365_v57  ;;  %v420_v63 = vpack.c.bf16 %v396_v59, %v394_v58 }
 0x116   :  { %v280_v0 = vadd.f32 %v279_v60, %v1464_v52  ;;  %v281_v1 = vpop.f32.mrb[17].mxu0  ;;  %v421_v2 = vpack.c.bf16 %v397_v62, %v395_v61 }
 0x117   :  { %v282_v3 = vadd.f32 %v281_v1, %v1466_v53  ;;  %v283_v4 = vpop.f32.mrb[18].mxu0 }
 0x118   :  { %v366_v5 = vmul.f32 0.25, %v280_v0  ;;  %v284_v6 = vadd.f32 %v283_v4, %v1464_v52  ;;  %v285_v7 = vpop.f32.mrb[19].mxu0  ;;  %621 = vmatprep.mubr.bf16.mxu1 %v421_v2  ;;  %vm334_vm0 = vcmp.gt.f32.partialorder %v280_v0, 0.0 }
 0x119   :  { %v367_v8 = vmul.f32 0.25, %v282_v3  ;;  %v286_v9 = vadd.f32 %v285_v7, %v1466_v53  ;;  %622 = vmatmul.mubr.bf16.gmra.mrb[12].mxu1 %v420_v63  ;;  %vm335_vm1 = vcmp.gt.f32.partialorder %v282_v3, 0.0 }
 0x11a   :  { %vm336_vm2 = vcmp.gt.f32.partialorder %v284_v6, 0.0  ;;  %v368_v10 = vmul.f32 0.25, %v284_v6  ;;  %v398_v12 = vsel %vm334_vm0, %v280_v0, %v366_v5 }
 0x11b   :  { %vm337_vm3 = vcmp.gt.f32.partialorder %v286_v9, 0.0  ;;  %v369_v11 = vmul.f32 0.25, %v286_v9  ;;  %v399_v15 = vsel %vm335_vm1, %v282_v3, %v367_v8 }
 0x11c   :  { %v400_v13 = vsel %vm336_vm2, %v284_v6, %v368_v10 }
 0x11d   :  { %v289_v14 = vpop.f32.mrb[20].mxu0  ;;  %v401_v16 = vsel %vm337_vm3, %v286_v9, %v369_v11  ;;  %v422_v17 = vpack.c.bf16 %v400_v13, %v398_v12  ;;  %v1509_v11 = vld [vmem:[%s1625_s5] ss:$0 sm:$0xff] }
 0x11e   :  { %v290_v18 = vadd.f32 %v289_v14, %v1464_v52  ;;  %v291_v19 = vpop.f32.mrb[21].mxu0  ;;  %v423_v20 = vpack.c.bf16 %v401_v16, %v399_v15 }
 0x11f   :  { %v292_v21 = vadd.f32 %v291_v19, %v1466_v53  ;;  %v293_v22 = vpop.f32.mrb[22].mxu0 }
 0x120   :  { %v370_v23 = vmul.f32 0.25, %v290_v18  ;;  %v294_v24 = vadd.f32 %v293_v22, %v1464_v52  ;;  %v295_v25 = vpop.f32.mrb[23].mxu0  ;;  %629 = vmatprep.mubr.bf16.mxu1 %v423_v20  ;;  %vm338_vm4 = vcmp.gt.f32.partialorder %v290_v18, 0.0 }
 0x121   :  { %v371_v26 = vmul.f32 0.25, %v292_v21  ;;  %v296_v27 = vadd.f32 %v295_v25, %v1466_v53  ;;  %630 = vmatmul.mubr.bf16.gmra.mrb[16].mxu1 %v422_v17  ;;  %vm339_vm5 = vcmp.gt.f32.partialorder %v292_v21, 0.0 }
 0x122   :  { %vm340_vm6 = vcmp.gt.f32.partialorder %v294_v24, 0.0  ;;  %v372_v28 = vmul.f32 0.25, %v294_v24  ;;  %v402_v30 = vsel %vm338_vm4, %v290_v18, %v370_v23 }
 0x123   :  { %vm341_vm7 = vcmp.gt.f32.partialorder %v296_v27, 0.0  ;;  %v373_v29 = vmul.f32 0.25, %v296_v27  ;;  %v403_v33 = vsel %vm339_vm5, %v292_v21, %v371_v26 }
 0x124   :  { %v404_v31 = vsel %vm340_vm6, %v294_v24, %v372_v28 }
 0x125   :  { %v299_v32 = vpop.f32.mrb[24].mxu0  ;;  %v405_v34 = vsel %vm341_vm7, %v296_v27, %v373_v29  ;;  %v424_v35 = vpack.c.bf16 %v404_v31, %v402_v30 }
 0x126   :  { %v300_v36 = vadd.f32 %v299_v32, %v1464_v52  ;;  %v301_v37 = vpop.f32.mrb[25].mxu0  ;;  %v425_v38 = vpack.c.bf16 %v405_v34, %v403_v33 }
 0x127   :  { %v302_v39 = vadd.f32 %v301_v37, %v1466_v53  ;;  %v303_v40 = vpop.f32.mrb[26].mxu0 }
 0x128   :  { %v374_v41 = vmul.f32 0.25, %v300_v36  ;;  %v304_v42 = vadd.f32 %v303_v40, %v1464_v52  ;;  %v305_v43 = vpop.f32.mrb[27].mxu0  ;;  %637 = vmatprep.mubr.bf16.mxu1 %v425_v38  ;;  %vm342_vm8 = vcmp.gt.f32.partialorder %v300_v36, 0.0 }
 0x129   :  { %v375_v44 = vmul.f32 0.25, %v302_v39  ;;  %v306_v45 = vadd.f32 %v305_v43, %v1466_v53  ;;  %638 = vmatmul.mubr.bf16.gmra.mrb[20].mxu1 %v424_v35  ;;  %vm343_vm9 = vcmp.gt.f32.partialorder %v302_v39, 0.0 }
 0x12a   :  { %vm344_vm10 = vcmp.gt.f32.partialorder %v304_v42, 0.0  ;;  %v376_v46 = vmul.f32 0.25, %v304_v42  ;;  %v406_v48 = vsel %vm342_vm8, %v300_v36, %v374_v41 }
 0x12b   :  { %vm345_vm11 = vcmp.gt.f32.partialorder %v306_v45, 0.0  ;;  %v377_v47 = vmul.f32 0.25, %v306_v45  ;;  %v407_v51 = vsel %vm343_vm9, %v302_v39, %v375_v44 }
 0x12c   :  { %v408_v49 = vsel %vm344_vm10, %v304_v42, %v376_v46 }
 0x12d   :  { %v309_v50 = vpop.f32.mrb[28].mxu0  ;;  %v409_v54 = vsel %vm345_vm11, %v306_v45, %v377_v47  ;;  %v426_v55 = vpack.c.bf16 %v408_v49, %v406_v48 }
 0x12e   :  { %v310_v56 = vadd.f32 %v309_v50, %v1464_v52  ;;  %v311_v57 = vpop.f32.mrb[29].mxu0  ;;  %v427_v58 = vpack.c.bf16 %v409_v54, %v407_v51 }
 0x12f   :  { %v312_v59 = vadd.f32 %v311_v57, %v1466_v53  ;;  %v313_v60 = vpop.f32.mrb[30].mxu0 }
 0x130   :  { %v378_v61 = vmul.f32 0.25, %v310_v56  ;;  %v314_v62 = vadd.f32 %v313_v60, %v1464_v52  ;;  %v315_v63 = vpop.f32.mrb[31].mxu0  ;;  %645 = vmatprep.mubr.bf16.mxu1 %v427_v58  ;;  %vm346_vm12 = vcmp.gt.f32.partialorder %v310_v56, 0.0  ;;  %v1256_v52 = vld [vmem:[%s1623_s6 + $0x30] sm:$0xff]  }
 0x131   :  { %v379_v0 = vmul.f32 0.25, %v312_v59  ;;  %v316_v1 = vadd.f32 %v315_v63, %v1466_v53  ;;  %646 = vmatmul.mubr.bf16.gmra.mrb[24].mxu1 %v426_v55  ;;  %vm347_vm13 = vcmp.gt.f32.partialorder %v312_v59, 0.0  ;;  %1159 = vmatprep.subr.bf16.mxu0 %v1256_v52  ;;  %v1257_v53 = vld [vmem:[%s1623_s6 + $0x38] sm:$0xff]  }
 0x132   :  { %vm348_vm14 = vcmp.gt.f32.partialorder %v314_v62, 0.0  ;;  %v380_v2 = vmul.f32 0.25, %v314_v62  ;;  %v410_v4 = vsel %vm346_vm12, %v310_v56, %v378_v61  ;;  %1160 = vmatpush3.bf16.msra.mxu0 %v1256_v52 }
 0x133   :  { %vm349_vm15 = vcmp.gt.f32.partialorder %v316_v1, 0.0  ;;  %v381_v3 = vmul.f32 0.25, %v316_v1  ;;  %v411_v6 = vsel %vm347_vm13, %v312_v59, %v379_v0  ;;  %1161 = vmatprep.subr.bf16.mxu0 %v1257_v53 }
 0x134   :  { %v412_v5 = vsel %vm348_vm14, %v314_v62, %v380_v2 }
 0x135   :  { %v413_v7 = vsel %vm349_vm15, %v316_v1, %v381_v3  ;;  %v428_v8 = vpack.c.bf16 %v412_v5, %v410_v4 }
 0x136   :  { %v429_v9 = vpack.c.bf16 %v413_v7, %v411_v6  ;;  %1162 = vmatpush3.bf16.msra.mxu0 %v1257_v53 }
 0x138   :  { %653 = vmatprep.mubr.bf16.mxu1 %v429_v9 }
 0x139   :  { %654 = vmatmul.mubr.bf16.gmra.mrb[28].mxu1 %v428_v8 }
 0x1d4   :  { %v1074_v10 = vpop.f32.mrb[0].mxu1 }
 0x1d5   :  { %v1075_v12 = vpop.f32.mrb[1].mxu1 }
 0x1d6   :  { %v1076_v13 = vadd.f32 %v1075_v12, %v1074_v10  ;;  %v1077_v14 = vpop.f32.mrb[2].mxu1 }
 0x1d7   :  { %v1078_v15 = vpop.f32.mrb[3].mxu1 }
 0x1d8   :  { %v600_v16 = vadd.f32 %v1076_v13, %v1509_v11  ;;  %v1079_v17 = vadd.f32 %v1078_v15, %v1077_v14 }
 0x1da   :  { %v678_v18 = vmul.f32 0.25, %v600_v16  ;;  %v603_v19 = vadd.f32 %v1079_v17, %v1509_v11  ;;  %vm662_vm0 = vcmp.gt.f32.partialorder %v600_v16, 0.0 }
 0x1dc   :  { %vm663_vm1 = vcmp.gt.f32.partialorder %v603_v19, 0.0  ;;  %v679_v20 = vmul.f32 0.25, %v603_v19  ;;  %v1080_v21 = vpop.f32.mrb[4].mxu1  ;;  %v694_v25 = vsel %vm662_vm0, %v600_v16, %v678_v18  ;;  %vm1264_vm0 = vmmov 0  }
 0x1dd   :  { %v1081_v22 = vpop.f32.mrb[5].mxu1 }
 0x1de   :  { %v1082_v23 = vadd.f32 %v1081_v22, %v1080_v21  ;;  %v1083_v24 = vpop.f32.mrb[6].mxu1  ;;  %v695_v26 = vsel %vm663_vm1, %v603_v19, %v679_v20  ;;  %vm927_vm1 = vcmask 261120  }
 0x1df   :  { %v1084_v27 = vpop.f32.mrb[7].mxu1  ;;  %v710_v28 = vpack.c.bf16 %v695_v26, %v694_v25 }
 0x1e0   :  { %v608_v29 = vadd.f32 %v1082_v23, %v1509_v11  ;;  %v1085_v30 = vadd.f32 %v1084_v27, %v1083_v24 }
 0x1e1   :  { %1163 = vmatprep.mubr.bf16.mxu0 %v710_v28 }
 0x1e2   :  { %v680_v31 = vmul.f32 0.25, %v608_v29  ;;  %v611_v32 = vadd.f32 %v1085_v30, %v1509_v11  ;;  %vm664_vm2 = vcmp.gt.f32.partialorder %v608_v29, 0.0 }
 0x1e4   :  { %vm665_vm3 = vcmp.gt.f32.partialorder %v611_v32, 0.0  ;;  %v681_v33 = vmul.f32 0.25, %v611_v32  ;;  %v1086_v34 = vpop.f32.mrb[8].mxu1  ;;  %v696_v36 = vsel %vm664_vm2, %v608_v29, %v680_v31 }
 0x1e5   :  { %v1087_v35 = vpop.f32.mrb[9].mxu1 }
 0x1e6   :  { %v697_v37 = vsel %vm665_vm3, %v611_v32, %v681_v33  ;;  %v1088_v38 = vadd.f32 %v1087_v35, %v1086_v34  ;;  %v1089_v39 = vpop.f32.mrb[10].mxu1 }
 0x1e7   :  { %v711_v40 = vpack.c.bf16 %v697_v37, %v696_v36  ;;  %v1090_v41 = vpop.f32.mrb[11].mxu1 }
 0x1e8   :  { %v616_v42 = vadd.f32 %v1088_v38, %v1509_v11  ;;  %v1091_v43 = vadd.f32 %v1090_v41, %v1089_v39 }
 0x1e9   :  { %1164 = vmatmul.mubr.bf16.vlgmr.msra.gmra.mrb[32].mxu0 %v711_v40 }
 0x1ea   :  { %v682_v44 = vmul.f32 0.25, %v616_v42  ;;  %v619_v45 = vadd.f32 %v1091_v43, %v1509_v11  ;;  %vm666_vm4 = vcmp.gt.f32.partialorder %v616_v42, 0.0 }
 0x1ec   :  { %vm667_vm5 = vcmp.gt.f32.partialorder %v619_v45, 0.0  ;;  %v683_v46 = vmul.f32 0.25, %v619_v45  ;;  %v1092_v47 = vpop.f32.mrb[12].mxu1  ;;  %v698_v51 = vsel %vm666_vm4, %v616_v42, %v682_v44 }
 0x1ed   :  { %v1093_v48 = vpop.f32.mrb[13].mxu1 }
 0x1ee   :  { %v1094_v49 = vadd.f32 %v1093_v48, %v1092_v47  ;;  %v1095_v50 = vpop.f32.mrb[14].mxu1  ;;  %v699_v54 = vsel %vm667_vm5, %v619_v45, %v683_v46 }
 0x1ef   :  { %v1096_v55 = vpop.f32.mrb[15].mxu1  ;;  %v712_v56 = vpack.c.bf16 %v699_v54, %v698_v51  ;;  %v1263_v54 = vmov 0.0  }
 0x1f0   :  { %v624_v57 = vadd.f32 %v1094_v49, %v1509_v11  ;;  %v1097_v58 = vadd.f32 %v1096_v55, %v1095_v50  ;;  %1179 = vmatprep.subr.bf16.mxu1 %v1263_v54  ;;  %1195 = vmatprep.mubr.msk.bf16.mxu1 %vm1264_vm0, %v1263_v54  ;;  %v1532_v55 = vld [vmem:[%s1626_s7] ss:$0 sm:$0xff] }
 0x1f1   :  { %1167 = vmatprep.mubr.bf16.mxu0 %v712_v56 }
 0x1f2   :  { %v684_v59 = vmul.f32 0.25, %v624_v57  ;;  %v627_v60 = vadd.f32 %v1097_v58, %v1509_v11  ;;  %vm668_vm6 = vcmp.gt.f32.partialorder %v624_v57, 0.0  ;;  %v888_v58 = vld [vmem:[%s1627_s1 + $0x10] sm:$0xff] }
 0x1f4   :  { %vm669_vm7 = vcmp.gt.f32.partialorder %v627_v60, 0.0  ;;  %v685_v61 = vmul.f32 0.25, %v627_v60  ;;  %v1098_v62 = vpop.f32.mrb[16].mxu1  ;;  %v700_v2 = vsel %vm668_vm6, %v624_v57, %v684_v59 }
 0x1f5   :  { %v1099_v63 = vpop.f32.mrb[17].mxu1 }
 0x1f6   :  { %v1100_v0 = vadd.f32 %v1099_v63, %v1098_v62  ;;  %v1101_v1 = vpop.f32.mrb[18].mxu1  ;;  %v701_v3 = vsel %vm669_vm7, %v627_v60, %v685_v61  ;;  %v889_v61 = vld [vmem:[%s1627_s1 + $0x18] sm:$0xff]  ;;  %v886_v62 = vld [vmem:[%s1627_s1] sm:$0xff] }
 0x1f7   :  { %v1102_v4 = vpop.f32.mrb[19].mxu1  ;;  %v713_v5 = vpack.c.bf16 %v701_v3, %v700_v2 }
 0x1f8   :  { %v632_v6 = vadd.f32 %v1100_v0, %v1509_v11  ;;  %v1103_v7 = vadd.f32 %v1102_v4, %v1101_v1  ;;  %v887_v1 = vld [vmem:[%s1627_s1 + $0x8] sm:$0xff] }
 0x1f9   :  { %1168 = vmatmul.mubr.bf16.gmra.mrb[36].mxu0 %v713_v5 }
 0x1fa   :  { %v686_v8 = vmul.f32 0.25, %v632_v6  ;;  %v635_v9 = vadd.f32 %v1103_v7, %v1509_v11  ;;  %vm670_vm8 = vcmp.gt.f32.partialorder %v632_v6, 0.0 }
 0x1fc   :  { %vm671_vm9 = vcmp.gt.f32.partialorder %v635_v9, 0.0  ;;  %v687_v52 = vmul.f32 0.25, %v635_v9  ;;  %v1104_v53 = vpop.f32.mrb[20].mxu1  ;;  %v702_v14 = vsel %vm670_vm8, %v632_v6, %v686_v8 }
 0x1fd   :  { %v1105_v10 = vpop.f32.mrb[21].mxu1 }
 0x1fe   :  { %v1106_v12 = vadd.f32 %v1105_v10, %v1104_v53  ;;  %v1107_v13 = vpop.f32.mrb[22].mxu1  ;;  %v703_v15 = vsel %vm671_vm9, %v635_v9, %v687_v52 }
 0x1ff   :  { %v1108_v16 = vpop.f32.mrb[23].mxu1  ;;  %v714_v17 = vpack.c.bf16 %v703_v15, %v702_v14  ;;  %v893_v15 = vld [vmem:[%s1627_s1 + $0x38] sm:$0xff] }
 0x200   :  { %v640_v18 = vadd.f32 %v1106_v12, %v1509_v11  ;;  %v1109_v19 = vadd.f32 %v1108_v16, %v1107_v13  ;;  %v892_v12 = vld [vmem:[%s1627_s1 + $0x30] sm:$0xff] }
 0x201   :  { %1171 = vmatprep.mubr.bf16.mxu0 %v714_v17  ;;  %v890_v17 = vld [vmem:[%s1627_s1 + $0x20] sm:$0xff] }
 0x202   :  { %v688_v20 = vmul.f32 0.25, %v640_v18  ;;  %v643_v21 = vadd.f32 %v1109_v19, %v1509_v11  ;;  %vm672_vm10 = vcmp.gt.f32.partialorder %v640_v18, 0.0 }
 0x204   :  { %vm673_vm11 = vcmp.gt.f32.partialorder %v643_v21, 0.0  ;;  %v689_v22 = vmul.f32 0.25, %v643_v21  ;;  %v1110_v23 = vpop.f32.mrb[24].mxu1  ;;  %v704_v27 = vsel %vm672_vm10, %v640_v18, %v688_v20  ;;  %v891_v20 = vld [vmem:[%s1627_s1 + $0x28] sm:$0xff] }
 0x205   :  { %v1111_v24 = vpop.f32.mrb[25].mxu1 }
 0x206   :  { %v1112_v25 = vadd.f32 %v1111_v24, %v1110_v23  ;;  %v1113_v26 = vpop.f32.mrb[26].mxu1  ;;  %v705_v28 = vsel %vm673_vm11, %v643_v21, %v689_v22 }
 0x207   :  { %v1114_v29 = vpop.f32.mrb[27].mxu1  ;;  %v715_v30 = vpack.c.bf16 %v705_v28, %v704_v27 }
 0x208   :  { %v648_v31 = vadd.f32 %v1112_v25, %v1509_v11  ;;  %v1115_v32 = vadd.f32 %v1114_v29, %v1113_v26 }
 0x209   :  { %1172 = vmatmul.mubr.bf16.gmra.mrb[40].mxu0 %v715_v30 }
 0x20a   :  { %v690_v33 = vmul.f32 0.25, %v648_v31  ;;  %v651_v34 = vadd.f32 %v1115_v32, %v1509_v11  ;;  %vm674_vm12 = vcmp.gt.f32.partialorder %v648_v31, 0.0  ;;  %v896_v32 = vld [vmem:[%s1627_s1 + $0x50] sm:$0xff] }
 0x20c   :  { %vm675_vm13 = vcmp.gt.f32.partialorder %v651_v34, 0.0  ;;  %v691_v35 = vmul.f32 0.25, %v651_v34  ;;  %v1116_v36 = vpop.f32.mrb[28].mxu1  ;;  %v706_v40 = vsel %vm674_vm12, %v648_v31, %v690_v33 }
 0x20d   :  { %v1117_v37 = vpop.f32.mrb[29].mxu1 }
 0x20e   :  { %v1118_v38 = vadd.f32 %v1117_v37, %v1116_v36  ;;  %v1119_v39 = vpop.f32.mrb[30].mxu1  ;;  %v707_v41 = vsel %vm675_vm13, %v651_v34, %v691_v35  ;;  %v897_v35 = vld [vmem:[%s1627_s1 + $0x58] sm:$0xff]  ;;  %v894_v37 = vld [vmem:[%s1627_s1 + $0x40] sm:$0xff] }
 0x20f   :  { %v1120_v42 = vpop.f32.mrb[31].mxu1  ;;  %v716_v43 = vpack.c.bf16 %v707_v41, %v706_v40  ;;  %v895_v40 = vld [vmem:[%s1627_s1 + $0x48] sm:$0xff] }
 0x210   :  { %v656_v44 = vadd.f32 %v1118_v38, %v1509_v11  ;;  %v1121_v45 = vadd.f32 %v1120_v42, %v1119_v39 }
 0x211   :  { %1175 = vmatprep.mubr.bf16.mxu0 %v716_v43 }
 0x212   :  { %v692_v46 = vmul.f32 0.25, %v656_v44  ;;  %v659_v47 = vadd.f32 %v1121_v45, %v1509_v11  ;;  %vm676_vm14 = vcmp.gt.f32.partialorder %v656_v44, 0.0 }
 0x214   :  { %vm677_vm15 = vcmp.gt.f32.partialorder %v659_v47, 0.0  ;;  %v693_v48 = vmul.f32 0.25, %v659_v47  ;;  %v708_v49 = vsel %vm676_vm14, %v656_v44, %v692_v46 }
 0x216   :  { %v709_v50 = vsel %vm677_vm15, %v659_v47, %v693_v48 }
 0x217   :  { %v717_v51 = vpack.c.bf16 %v709_v50, %v708_v49 }
 0x219   :  { %1176 = vmatmul.mubr.bf16.gmra.mrb[44].mxu0 %v717_v51 }
 0x2bc   :  { %v1165_v56 = vpop.f32.mrb[32].mxu0 }
 0x2bd   :  { %v832_v11 = vadd.f32 %v1165_v56, %v1532_v55  ;;  %v823_v57 = vpop.f32.mrb[33].mxu0  ;;  %v900_v56 = vld [vmem:[%s1627_s1 + $0x70] sm:$0xff] }
 0x2be   :  { %v824_v59 = vadd.f32 %v1532_v55, %v823_v57  ;;  %v1166_v60 = vpop.f32.mrb[34].mxu0 }
 0x2bf   :  { %v835_v63 = vadd.f32 %v1166_v60, %v1532_v55  ;;  %v826_v0 = vpop.f32.mrb[35].mxu0  ;;  %v904_v3 = vmul.f32 %v888_v58, %v832_v11  ;;  %v901_v58 = vld [vmem:[%s1627_s1 + $0x78] sm:$0xff]  ;;  %v898_v60 = vld [vmem:[%s1627_s1 + $0x60] sm:$0xff] }
 0x2c0   :  { %v827_v2 = vadd.f32 %v1532_v55, %v826_v0  ;;  %v902_v5 = vmul.f32 %v886_v62, %v824_v59 }
 0x2c1   :  { %v905_v4 = vmul.f32 %v889_v61, %v835_v63  ;;  %v899_v63 = vld [vmem:[%s1627_s1 + $0x68] sm:$0xff] }
 0x2c2   :  { %v903_v6 = vmul.f32 %v887_v1, %v827_v2 }
 0x2c3   :  { %v919_v7 = vpack.c.bf16 %v905_v4, %v904_v3 }
 0x2c4   :  { %v918_v8 = vpack.c.bf16 %v903_v6, %v902_v5 }
 0x2c5   :  { %v935_v16 = vsel %vm927_vm1, %v919_v7, 0 }
 0x2c6   :  { %v932_v9 = vsel %vm927_vm1, %v918_v8, 0 }
 0x2c7   :  { %1180 = vmatpush3.bf16.xpose.msra.mxu1 %v932_v9 }
 0x2c8   :  { %1181 = vmatprep.subr.bf16.mxu1 %v1263_v54 }
 0x2cc   :  { %v1169_v52 = vpop.f32.mrb[36].mxu0 }
 0x2cd   :  { %v848_v53 = vadd.f32 %v1169_v52, %v1532_v55  ;;  %v839_v10 = vpop.f32.mrb[37].mxu0 }
 0x2ce   :  { %v840_v13 = vadd.f32 %v1532_v55, %v839_v10  ;;  %v1170_v14 = vpop.f32.mrb[38].mxu0 }
 0x2cf   :  { %v851_v18 = vadd.f32 %v1170_v14, %v1532_v55  ;;  %v842_v19 = vpop.f32.mrb[39].mxu0  ;;  %1182 = vmatpush3.bf16.xpose.msra.mxu1 %v935_v16  ;;  %v908_v22 = vmul.f32 %v892_v12, %v848_v53 }
 0x2d0   :  { %v843_v21 = vadd.f32 %v1532_v55, %v842_v19  ;;  %1183 = vmatprep.subr.bf16.mxu1 %v1263_v54  ;;  %v906_v24 = vmul.f32 %v890_v17, %v840_v13 }
 0x2d1   :  { %v909_v23 = vmul.f32 %v893_v15, %v851_v18 }
 0x2d2   :  { %v907_v25 = vmul.f32 %v891_v20, %v843_v21 }
 0x2d3   :  { %v921_v26 = vpack.c.bf16 %v909_v23, %v908_v22 }
 0x2d4   :  { %v920_v27 = vpack.c.bf16 %v907_v25, %v906_v24 }
 0x2d5   :  { %v941_v36 = vsel %vm927_vm1, %v921_v26, 0 }
 0x2d6   :  { %v938_v28 = vsel %vm927_vm1, %v920_v27, 0 }
 0x2d7   :  { %1184 = vmatpush3.bf16.xpose.msra.mxu1 %v938_v28 }
 0x2d8   :  { %1185 = vmatprep.subr.bf16.mxu1 %v1263_v54 }
 0x2dc   :  { %v1173_v29 = vpop.f32.mrb[40].mxu0 }
 0x2dd   :  { %v864_v30 = vadd.f32 %v1173_v29, %v1532_v55  ;;  %v855_v31 = vpop.f32.mrb[41].mxu0 }
 0x2de   :  { %v856_v33 = vadd.f32 %v1532_v55, %v855_v31  ;;  %v1174_v34 = vpop.f32.mrb[42].mxu0 }
 0x2df   :  { %v867_v38 = vadd.f32 %v1174_v34, %v1532_v55  ;;  %v858_v39 = vpop.f32.mrb[43].mxu0  ;;  %1186 = vmatpush3.bf16.xpose.msra.mxu1 %v941_v36  ;;  %v912_v42 = vmul.f32 %v896_v32, %v864_v30 }
 0x2e0   :  { %v859_v41 = vadd.f32 %v1532_v55, %v858_v39  ;;  %1187 = vmatprep.subr.bf16.mxu1 %v1263_v54  ;;  %v910_v44 = vmul.f32 %v894_v37, %v856_v33 }
 0x2e1   :  { %v913_v43 = vmul.f32 %v897_v35, %v867_v38 }
 0x2e2   :  { %v911_v45 = vmul.f32 %v895_v40, %v859_v41 }
 0x2e3   :  { %v923_v46 = vpack.c.bf16 %v913_v43, %v912_v42 }
 0x2e4   :  { %v922_v47 = vpack.c.bf16 %v911_v45, %v910_v44 }
 0x2e5   :  { %v947_v59 = vsel %vm927_vm1, %v923_v46, 0 }
 0x2e6   :  { %v944_v48 = vsel %vm927_vm1, %v922_v47, 0 }
 0x2e7   :  { %1188 = vmatpush3.bf16.xpose.msra.mxu1 %v944_v48 }
 0x2e8   :  { %1189 = vmatprep.subr.bf16.mxu1 %v1263_v54 }
 0x2ec   :  { %v1177_v49 = vpop.f32.mrb[44].mxu0 }
 0x2ed   :  { %v880_v50 = vadd.f32 %v1177_v49, %v1532_v55  ;;  %v871_v51 = vpop.f32.mrb[45].mxu0 }
 0x2ee   :  { %v872_v11 = vadd.f32 %v1532_v55, %v871_v51  ;;  %v1178_v57 = vpop.f32.mrb[46].mxu0 }
 0x2ef   :  { %v883_v61 = vadd.f32 %v1178_v57, %v1532_v55  ;;  %v874_v62 = vpop.f32.mrb[47].mxu0  ;;  %1190 = vmatpush3.bf16.xpose.msra.mxu1 %v947_v59  ;;  %v916_v1 = vmul.f32 %v900_v56, %v880_v50 }
 0x2f0   :  { %v875_v0 = vadd.f32 %v1532_v55, %v874_v62  ;;  %1191 = vmatprep.subr.bf16.mxu1 %v1263_v54  ;;  %v914_v3 = vmul.f32 %v898_v60, %v872_v11  ;;  %v926_v55 = vld [vmem:[%s1628_s8] sm:$0x1] }
 0x2f1   :  { %v917_v2 = vmul.f32 %v901_v58, %v883_v61 }
 0x2f2   :  { %v915_v4 = vmul.f32 %v899_v63, %v875_v0 }
 0x2f3   :  { %v925_v5 = vpack.c.bf16 %v917_v2, %v916_v1 }
 0x2f4   :  { %v924_v6 = vpack.c.bf16 %v915_v4, %v914_v3 }
 0x2f5   :  { %v953_v8 = vsel %vm927_vm1, %v925_v5, 0 }
 0x2f6   :  { %v950_v7 = vsel %vm927_vm1, %v924_v6, 0 }
 0x2f7   :  { %1192 = vmatpush3.bf16.xpose.msra.mxu1 %v950_v7 }
 0x2f8   :  { %1193 = vmatprep.subr.bf16.mxu1 %v1263_v54 }
 0x2ff   :  { %1194 = vmatpush3.bf16.xpose.msra.mxu1 %v953_v8 }
 0x306   :  { %1196 = vmatmul.mubr.msk.bf16.vlgmr.msra.gmra.mrb[32].mxu1 %vm927_vm1, %v926_v55 }
 0x3d9   :  { %v989_v9 = vpop.f32.mrb[32].mxu1 }
 0x3da   :  { %v1057_v52 = vmul.f32 -1.442695, %v989_v9  ;;  %v1197_v53 = vpop.f32.mrb[33].mxu1 }
 0x3db   :  { %v992_v10 = vpop.f32.mrb[34].mxu1 }
 0x3dc   :  { %1258 = vpow2.f32 %v1057_v52  ;;  %v1198_v12 = vpop.f32.mrb[35].mxu1 }
 0x3e6   :  { %v1259_v13 = vpop.eup %1258 }
 0x3e7   :  { %v998_v14 = vadd.f32 1.0, %v1259_v13 }
 0x3e9   :  { %1260 = vrcp.f32 %v998_v14 }
 0x3f3   :  { %v1261_v15 = vpop.eup %1260 }
 0x3f4   :  { %1001 = vst [vmem:[%s1629_s9] sm:$0x1] %v1261_v15 }

</bundles_post_ra>
